<compile_context>
chip_gen: v6e
topology: v6e:2x2x1
jax: 0.10.0
libtpu: 0.0.40
codegen_flags: <defaults>
</compile_context>

<pallas_src>
import functools

import jax
import jax.numpy as jnp
import numpy as np
from jax.experimental import pallas as pl
from jax.experimental.pallas import tpu as pltpu

EPS = 1e-5  # nn.LayerNorm default eps


# --------------------------------------------------------------------------
# Pallas kernels (transposed orientation: tokens on lanes).
# --------------------------------------------------------------------------
def _proj_bias_kernel(p_ref, w_ref, b_ref, o_ref):
    # p_ref : (K, T) bf16 patches, tokens on lanes
    # w_ref : (E, K) bf16 projection weight (resident every step)
    # b_ref : (E, 1) f32 conv bias
    # o_ref : (E, T) f32 output tile (lane-dense stores)
    acc = jnp.dot(w_ref[...], p_ref[...], preferred_element_type=jnp.float32)
    o_ref[...] = (acc + b_ref[...]).astype(o_ref.dtype)


def _proj_bias_ln_kernel(p_ref, w_ref, s_ref, o_ref):
    # s_ref : (E, 3) f32 = [conv bias | LN gamma | LN beta] columns
    acc = jnp.dot(w_ref[...], p_ref[...], preferred_element_type=jnp.float32)
    acc = acc + s_ref[:, 0:1]
    # LayerNorm over the embedding (sublane) axis, per token (biased variance).
    mean = jnp.mean(acc, axis=0, keepdims=True)
    cent = acc - mean
    var = jnp.mean(cent * cent, axis=0, keepdims=True)
    acc = cent * jax.lax.rsqrt(var + EPS) * s_ref[:, 1:2] + s_ref[:, 2:3]
    o_ref[...] = acc.astype(o_ref.dtype)


def _round_up(n, m):
    return ((n + m - 1) // m) * m


# --------------------------------------------------------------------------
# Full module forward.
# --------------------------------------------------------------------------
def patch_embed_3d(x, w, b, gamma=None, beta=None, *,
                   patch_size=(2, 4, 4), apply_norm=False):
    """PatchEmbed3D.forward.

    x : (B, C, D, H, W) float32, NCDHW (PyTorch layout)
    w : (E, C, pd, ph, pw)  Conv3d weight
    b : (E,)                Conv3d bias
    gamma, beta : (E,)      LayerNorm affine params (used iff apply_norm)
    returns (B, E, ceil(D/pd), ceil(H/ph), ceil(W/pw)) float32.
    """
    B, C, D, H, W = x.shape
    pd, ph, pw = patch_size
    E = w.shape[0]
    K = C * pd * ph * pw

    # Trailing-side zero pad to multiples of the patch size (matches F.pad).
    pad_d, pad_h, pad_w = (-D) % pd, (-H) % ph, (-W) % pw
    if pad_d or pad_h or pad_w:
        x = jnp.pad(x, ((0, 0), (0, 0), (0, pad_d), (0, pad_h), (0, pad_w)))
    Dp, Hp, Wp = D + pad_d, H + pad_h, W + pad_w
    Do, Ho, Wo = Dp // pd, Hp // ph, Wp // pw
    S = Do * Ho * Wo

    # Transposed im2col: ONE fused XLA pass (pad+reshape+transpose+bf16 cast)
    # producing (B, K, S) with tokens on the lane-dense last axis.  K flattens
    # (C, pd, ph, pw), matching w.reshape(E, K).
    pt = x.reshape(B, C, Do, pd, Ho, ph, Wo, pw)
    pt = pt.transpose(0, 1, 3, 5, 7, 2, 4, 6)      # (B, C, pd, ph, pw, Do, Ho, Wo)
    patches_t = pt.reshape(B, K, S).astype(jnp.bfloat16)
    w_ek = w.reshape(E, K).astype(jnp.bfloat16)

    # Token tile: multiple of 128 (lane-dense), large to amortise per-step
    # overhead, capped at 2048 so both v7x TensorCores get several steps and
    # double-buffered VMEM stays < ~3 MB.  Ragged last tile handled by Pallas.
    tile = max(128, min(2048, _round_up(S, 128)))
    grid = (B, pl.cdiv(S, tile))

    if apply_norm:
        if gamma is None:
            gamma = jnp.ones((E,), jnp.float32)
        if beta is None:
            beta = jnp.zeros((E,), jnp.float32)
        affine = jnp.stack(
            [b.astype(jnp.float32), gamma.astype(jnp.float32),
             beta.astype(jnp.float32)], axis=1)          # (E, 3)
        kern = _proj_bias_ln_kernel
    else:
        affine = b.reshape(E, 1).astype(jnp.float32)     # (E, 1)
        kern = _proj_bias_kernel

    out = pl.pallas_call(
        kern,
        out_shape=jax.ShapeDtypeStruct((B, E, S), jnp.float32),
        grid=grid,
        in_specs=[
            pl.BlockSpec((None, K, tile), lambda bi, si: (bi, 0, si)),
            pl.BlockSpec((E, K), lambda bi, si: (0, 0)),
            pl.BlockSpec(affine.shape, lambda bi, si: (0, 0)),
        ],
        out_specs=pl.BlockSpec((None, E, tile), lambda bi, si: (bi, 0, si)),
        compiler_params=pltpu.CompilerParams(
            dimension_semantics=("parallel", "parallel")),
    )(patches_t, w_ek, affine)

    # Metadata-only reshape back to the PyTorch NCDHW output convention.
    return out.reshape(B, E, Do, Ho, Wo)


# --------------------------------------------------------------------------
# Pure-JAX reference (mirrors the PyTorch forward) for correctness checking.
# --------------------------------------------------------------------------
def reference(x, w, b, gamma, beta, *, patch_size=(2, 4, 4), apply_norm=False):
    B, C, D, H, W = x.shape
    pd, ph, pw = patch_size
    pad_d, pad_h, pad_w = (-D) % pd, (-H) % ph, (-W) % pw
    if pad_d or pad_h or pad_w:
        x = jnp.pad(x, ((0, 0), (0, 0), (0, pad_d), (0, pad_h), (0, pad_w)))
    y = jax.lax.conv_general_dilated(
        x, w, window_strides=patch_size, padding="VALID",
        dimension_numbers=("NCDHW", "OIDHW", "NCDHW"),
        precision=jax.lax.Precision.HIGHEST)
    y = y + b.reshape(1, -1, 1, 1, 1)
    if apply_norm:
        mean = jnp.mean(y, axis=1, keepdims=True)
        var = jnp.mean(jnp.square(y - mean), axis=1, keepdims=True)
        y = (y - mean) / jnp.sqrt(var + EPS)
        y = y * gamma.reshape(1, -1, 1, 1, 1) + beta.reshape(1, -1, 1, 1, 1)
    return y


if __name__ == "__main__":
    key = jax.random.PRNGKey(0)
    k1, k2, k3, k4, k5, k6 = jax.random.split(key, 6)

    patch_size = (2, 4, 4)
    E, C = 96, 3

    # Shape 1: small, exercises the trailing D/H/W padding path (ragged tile).
    B, D, H, W = 2, 9, 30, 30
    x = jax.random.normal(k1, (B, C, D, H, W), jnp.float32)
    w = 0.05 * jax.random.normal(k2, (E, C) + patch_size, jnp.float32)
    b = 0.05 * jax.random.normal(k3, (E,), jnp.float32)
    gamma = 1.0 + 0.1 * jax.random.normal(k4, (E,), jnp.float32)
    beta = 0.1 * jax.random.normal(k5, (E,), jnp.float32)

    # norm_layer = nn.LayerNorm path (fused LayerNorm).
    fwd_norm = jax.jit(functools.partial(
        patch_embed_3d, patch_size=patch_size, apply_norm=True))
    out = jax.block_until_ready(fwd_norm(x, w, b, gamma, beta))
    ref = reference(x, w, b, gamma, beta, patch_size=patch_size,
                    apply_norm=True)
    assert out.shape == (B, E, (D + 1) // 2, (H + 3) // 4, (W + 3) // 4), out.shape
    np.testing.assert_allclose(np.asarray(out), np.asarray(ref),
                               rtol=2e-2, atol=2e-2)

    # Default path (norm_layer=None): conv + bias only.
    fwd_plain = jax.jit(functools.partial(
        patch_embed_3d, patch_size=patch_size, apply_norm=False))
    out2 = jax.block_until_ready(fwd_plain(x, w, b))
    ref2 = reference(x, w, b, gamma, beta, patch_size=patch_size,
                     apply_norm=False)
    np.testing.assert_allclose(np.asarray(out2), np.asarray(ref2),
                               rtol=2e-2, atol=2e-2)

    # Shape 2: enough tokens per batch (5*24*24 = 2880 > 2048) to exercise the
    # multi-step spatial grid plus the masked ragged last tile.
    B2, D2, H2, W2 = 2, 10, 96, 96
    x2 = jax.random.normal(k6, (B2, C, D2, H2, W2), jnp.float32)
    out3 = jax.block_until_ready(fwd_norm(x2, w, b, gamma, beta))
    ref3 = reference(x2, w, b, gamma, beta, patch_size=patch_size,
                     apply_norm=True)
    np.testing.assert_allclose(np.asarray(out3), np.asarray(ref3),
                               rtol=2e-2, atol=2e-2)

    print("KERNEL_OK")
</pallas_src>

<mosaic_0001>
module attributes {stable_mosaic.version = 11 : i64} {
  func.func @_proj_bias_ln_kernel(%arg0: i32, %arg1: i32, %arg2: memref<1x96x384xbf16, #tpu.memory_space<vmem>>, %arg3: memref<96x96xbf16, #tpu.memory_space<vmem>>, %arg4: memref<96x3xf32, #tpu.memory_space<vmem>>, %arg5: memref<1x96x384xf32, #tpu.memory_space<vmem>>) attributes {dimension_semantics = [#tpu.dimension_semantics<parallel>, #tpu.dimension_semantics<parallel>], iteration_bounds = array<i64: 2, 1>, scalar_prefetch = 0 : i64, scratch_operands = 0 : i64, tpu.core_type = #tpu.core_type<tc>, window_params = [{transform_indices = @transform_0, window_bounds = array<i64: 1, 96, 384>}, {pipeline_mode = #tpu.pipeline_mode<synchronous>, transform_indices = @transform_1, window_bounds = array<i64: 96, 96>}, {pipeline_mode = #tpu.pipeline_mode<synchronous>, transform_indices = @transform_2, window_bounds = array<i64: 96, 3>}, {transform_indices = @transform_3, window_bounds = array<i64: 1, 96, 384>}]} {
    %c0 = arith.constant 0 : index
    %c0_0 = arith.constant 0 : index
    %0 = vector.load %arg3[%c0, %c0_0] : memref<96x96xbf16, #tpu.memory_space<vmem>>, vector<96x96xbf16>
    %c0_1 = arith.constant 0 : index
    %c0_2 = arith.constant 0 : index
    %c0_3 = arith.constant 0 : index
    %1 = vector.load %arg2[%c0_1, %c0_2, %c0_3] : memref<1x96x384xbf16, #tpu.memory_space<vmem>>, vector<1x96x384xbf16>
    %2 = vector.shape_cast %1 : vector<1x96x384xbf16> to vector<96x384xbf16>
    %cst = arith.constant dense<0.000000e+00> : vector<96x384xf32>
    %3 = tpu.matmul %0, %2, %cst {dimension_numbers = #tpu.dot_dimension_numbers<[1], [0], [0], [1], [0, 0, 1, 1], [], []>} : vector<96x96xbf16>, vector<96x384xbf16>, vector<96x384xf32> -> vector<96x384xf32>
    %c0_4 = arith.constant 0 : index
    %c0_5 = arith.constant 0 : index
    %4 = vector.load %arg4[%c0_4, %c0_5] : memref<96x3xf32, #tpu.memory_space<vmem>>, vector<96x1xf32>
    %5 = vector.broadcast %4 : vector<96x1xf32> to vector<96x384xf32>
    %6 = arith.addf %3, %5 : vector<96x384xf32>
    %cst_6 = arith.constant dense<0.000000e+00> : vector<384xf32>
    %7 = vector.multi_reduction <add>, %6, %cst_6 [0] : vector<96x384xf32> to vector<384xf32>
    %8 = vector.shape_cast %7 : vector<384xf32> to vector<1x384xf32>
    %cst_7 = arith.constant 9.600000e+01 : f32
    %9 = vector.broadcast %cst_7 : f32 to vector<1x384xf32>
    %10 = arith.divf %8, %9 : vector<1x384xf32>
    %11 = vector.broadcast %10 : vector<1x384xf32> to vector<96x384xf32>
    %12 = arith.subf %6, %11 : vector<96x384xf32>
    %13 = arith.mulf %12, %12 : vector<96x384xf32>
    %cst_8 = arith.constant dense<0.000000e+00> : vector<384xf32>
    %14 = vector.multi_reduction <add>, %13, %cst_8 [0] : vector<96x384xf32> to vector<384xf32>
    %15 = vector.shape_cast %14 : vector<384xf32> to vector<1x384xf32>
    %cst_9 = arith.constant 9.600000e+01 : f32
    %16 = vector.broadcast %cst_9 : f32 to vector<1x384xf32>
    %17 = arith.divf %15, %16 : vector<1x384xf32>
    %cst_10 = arith.constant 9.99999974E-6 : f32
    %18 = vector.broadcast %cst_10 : f32 to vector<1x384xf32>
    %19 = arith.addf %17, %18 : vector<1x384xf32>
    %20 = math.rsqrt %19 : vector<1x384xf32>
    %21 = vector.broadcast %20 : vector<1x384xf32> to vector<96x384xf32>
    %22 = arith.mulf %12, %21 : vector<96x384xf32>
    %c0_11 = arith.constant 0 : index
    %c1 = arith.constant 1 : index
    %23 = vector.load %arg4[%c0_11, %c1] : memref<96x3xf32, #tpu.memory_space<vmem>>, vector<96x1xf32>
    %24 = vector.broadcast %23 : vector<96x1xf32> to vector<96x384xf32>
    %25 = arith.mulf %22, %24 : vector<96x384xf32>
    %c0_12 = arith.constant 0 : index
    %c2 = arith.constant 2 : index
    %26 = vector.load %arg4[%c0_12, %c2] : memref<96x3xf32, #tpu.memory_space<vmem>>, vector<96x1xf32>
    %27 = vector.broadcast %26 : vector<96x1xf32> to vector<96x384xf32>
    %28 = arith.addf %25, %27 : vector<96x384xf32>
    %c0_13 = arith.constant 0 : index
    %c0_14 = arith.constant 0 : index
    %c0_15 = arith.constant 0 : index
    %29 = vector.load %arg5[%c0_13, %c0_14, %c0_15] : memref<1x96x384xf32, #tpu.memory_space<vmem>>, vector<1x96x384xf32>
    %30 = vector.shape_cast %29 : vector<1x96x384xf32> to vector<96x384xf32>
    %31 = vector.shape_cast %28 : vector<96x384xf32> to vector<1x96x384xf32>
    tpu.vector_store %arg5[%c0_13, %c0_14, %c0_15], %31 {strides = array<i32>} : memref<1x96x384xf32, #tpu.memory_space<vmem>>, vector<1x96x384xf32>,
    return
  }
  func.func @transform_0(%arg0: i32, %arg1: i32) -> (i32, i32, i32) {
    %c0_i32 = arith.constant 0 : i32
    %c0_i32_0 = arith.constant 0 : i32
    return %arg0, %c0_i32, %arg1 : i32, i32, i32
  }
  func.func @transform_1(%arg0: i32, %arg1: i32) -> (i32, i32) {
    %c0_i32 = arith.constant 0 : i32
    %c0_i32_0 = arith.constant 0 : i32
    %c0_i32_1 = arith.constant 0 : i32
    return %c0_i32, %c0_i32_0 : i32, i32
  }
  func.func @transform_2(%arg0: i32, %arg1: i32) -> (i32, i32) {
    %c0_i32 = arith.constant 0 : i32
    %c0_i32_0 = arith.constant 0 : i32
    %c0_i32_1 = arith.constant 0 : i32
    return %c0_i32, %c0_i32_0 : i32, i32
  }
  func.func @transform_3(%arg0: i32, %arg1: i32) -> (i32, i32, i32) {
    %c0_i32 = arith.constant 0 : i32
    %c0_i32_0 = arith.constant 0 : i32
    return %arg0, %c0_i32, %arg1 : i32, i32, i32
  }
}

</mosaic_0001>

<bundles_post_ra>
// kernel: patch_embed_3d.1
= control target key start
LH: loop header
LB: loop body
LE: loop exit
PB: predicated region body
PF: predicated region fallthrough
CT: control target
= control target key end

     0   :  { %s1351_s12 = smov 0   ;;  %s1353_s13 = smov 0   ;;  %s2127_s0 = inlined_call_operand.vmem [shape: bf16[2,96,320], index: 0, kind: input, shape index: {}]   ;;  %s2128_s1 = inlined_call_operand.vmem [shape: bf16[96,96], index: 1, kind: input, shape index: {}]   ;;  %s2129_s2 = inlined_call_operand.vmem [shape: f32[96,3], index: 2, kind: input, shape index: {}]   ;;  %s2130_s3 = inlined_call_operand.vmem [shape: f32[2,96,320], index: 3, kind: output, shape index: {}]  }
   0x1   :  { %s1355_s14 = smov 0  }
   0x2 LB: > { %s25_s15 = sadd.s32 1, %s1322_s13  ;;  %p1156_p0 = scmp.ge.s32.totalorder %s1326_s14, 1  ;;  %s1326_s14 = sphi %s1355_s14, %s13_s14   ;;  %s1322_s13 = sphi %s1353_s13, %s2141_s13   ;;  %s1318_s12 = sphi %s1351_s12, %s2140_s12  }
   0x3   : > { %p27_p1 = scmp.ge.s32.totalorder %s25_s15, 2  ;;  %p158_p2 = scmp.lt.s32.totalorder %s1326_s14, 3 }
   0x5   : > { %s2143_s15 = smov (%p27_p1, %s25_s15), 0  ;;  %p159_p3 = pnand %p1156_p0, %p158_p2 }
   0x7   : > { %162 = sbr.rel (%p159_p3) target bundleno = 386 (0x182), region = 32 }
   0xc   : > { %p191_p4 = scmp.lt.s32.totalorder %s1318_s12, 1  ;;  %v1328_v0 = vmov 0   ;;  %v1373_v1 = vld [vmem:[%s2128_s1] sm:$0xff]   ;;  %vm445_vm0 = vcmask 785408   ;;  %v1397_v4 = vld [vmem:[%s2129_s2 + $0x8] sm:$0xff]  ;;  %v1416_v18 = vld [vmem:[%s2129_s2 + $0x10] sm:$0xff] }
   0xd   : > { %496 = vmatprep.mubr.bf16.mxu0 %v1328_v0  ;;  %1262 = vset.pattern.permute.xlu0 %v1328_v0  ;;  %v1390_v2 = vld [vmem:[%s2129_s2] sm:$0xff]  ;;  %v1429_v21 = vld [vmem:[%s2129_s2 + $0x18] sm:$0xff]  ;;  %v1434_v22 = vld [vmem:[%s2129_s2 + $0x30] sm:$0xff]  ;;  %v1329_v35 = vmov 1   ;;  %v1330_v38 = vmov 2  }
   0xe   : > { %s2145_s12 = smov (!%p191_p4, %s1318_s12), 1  ;;  %1263 = vset.pattern.permute.xlu1 %v1328_v0  ;;  %1221 = vmatprep.mubr.msk.bf16.mxu1 %vm445_vm0, %v1373_v1  ;;  %v1421_v19 = vld [vmem:[%s2129_s2 + $0x20] sm:$0xff]  ;;  %v252_v26 = vld [vmem:[%s2129_s2 + $0x28] sm:$0xff]  ;;  %v1294_v29 = vld [vmem:[%s2128_s1 + $0x10] sm:$0xff]  }
   0xf   : > { %s1233_s18 = smul.u32 144, %s2145_s12  ;;  %261 = vperm.xlu0 %1262, %v1390_v2   ;;  %271 = vperm.xlu1 %1263, %v1416_v18   ;;  %v255_v27 = vld [vmem:[%s2129_s2 + $0x40] sm:$0xff]  ;;  %v1293_v28 = vld [vmem:[%s2128_s1 + $0x8] sm:$0xff]   ;;  %v254_v30 = vld [vmem:[%s2129_s2 + $0x38] sm:$0xff] }
  0x10   : > { %v257_v31 = vld [vmem:[%s2129_s2 + $0x50] sm:$0xff]  ;;  %v256_v32 = vld [vmem:[%s2129_s2 + $0x48] sm:$0xff]  ;;  %v1295_v33 = vld [vmem:[%s2128_s1 + $0x18] sm:$0xff]   ;;  %s1234_s6 = smul.u32 288, %s2145_s12 }
  0x11   : > { %s1385_s21 = scalar_lea.vmem %s2127_s0, %s1233_s18  ;;  %v1296_v34 = vld [vmem:[%s2128_s1 + $0x20] sm:$0xff]   ;;  %v258_v36 = vld [vmem:[%s2129_s2 + $0x58] sm:$0xff]  ;;  %v1297_v37 = vld [vmem:[%s2128_s1 + $0x28] sm:$0xff]  }
  0x12   : > { %v1268_v3 = vld [vmem:[%s1385_s21 + $0x7c] ss:$12 sps:$4 sm:$0xff]   ;;  %v1270_v5 = vld [vmem:[%s1385_s21 + $0x80] ss:$12 sps:$4 sm:$0xff]   ;;  %v1271_v6 = vld [vmem:[%s1385_s21 + $0x78] ss:$12 sps:$4 sm:$0xff]   ;;  %s1945_s8 = scalar_lea.vmem %s2130_s3, %s1234_s6 }
  0x13   : > { %468 = vmatprep.subr.bf16.mxu0 %v1268_v3  ;;  %1209 = vmatprep.subr.bf16.mxu1 %v1270_v5  ;;  %v1272_v7 = vld [vmem:[%s1385_s21 + $0x64] ss:$12 sps:$4 sm:$0xff]   ;;  %v1274_v8 = vld [vmem:[%s1385_s21 + $0x68] ss:$12 sps:$4 sm:$0xff]   ;;  %v1275_v9 = vld [vmem:[%s1385_s21 + $0x60] ss:$12 sps:$4 sm:$0xff]  }
  0x14   : > { %469 = vmatpush1.bf16.msra.mxu0 %v1271_v6  ;;  %1210 = vmatpush3.bf16.msra.mxu1 %v1270_v5  ;;  %v1276_v10 = vld [vmem:[%s1385_s21 + $0x4c] ss:$12 sps:$4 sm:$0xff]   ;;  %v1278_v11 = vld [vmem:[%s1385_s21 + $0x50] ss:$12 sps:$4 sm:$0xff]   ;;  %v1279_v12 = vld [vmem:[%s1385_s21 + $0x48] ss:$12 sps:$4 sm:$0xff]  }
  0x15   : > { %470 = vmatprep.subr.bf16.mxu0 %v1272_v7  ;;  %266 = vperm.xlu0 %1262, %v1397_v4   ;;  %v1280_v13 = vld [vmem:[%s1385_s21 + $0x34] ss:$12 sps:$4 sm:$0xff]   ;;  %v1282_v14 = vld [vmem:[%s1385_s21 + $0x38] ss:$12 sps:$4 sm:$0xff]   ;;  %v1283_v15 = vld [vmem:[%s1385_s21 + $0x30] ss:$12 sps:$4 sm:$0xff]  }
  0x16   : > { %1211 = vmatprep.subr.bf16.mxu1 %v1274_v8  ;;  %v1284_v16 = vld [vmem:[%s1385_s21 + $0x1c] ss:$12 sps:$4 sm:$0xff]   ;;  %v1286_v17 = vld [vmem:[%s1385_s21 + $0x20] ss:$12 sps:$4 sm:$0xff]   ;;  %v1287_v20 = vld [vmem:[%s1385_s21 + $0x18] ss:$12 sps:$4 sm:$0xff]   ;;  %276 = vperm.xlu1 %1263, %v1429_v21  }
  0x17   : > { %v1288_v23 = vld [vmem:[%s1385_s21 + $0x4] ss:$12 sps:$4 sm:$0xff]   ;;  %v1290_v24 = vld [vmem:[%s1385_s21 + $0x8] ss:$12 sps:$4 sm:$0xff]   ;;  %v1291_v25 = vld [vmem:[%s1385_s21] ss:$12 sps:$4 sm:$0xff]  }
  0x18   : > { %471 = vmatpush1.bf16.msra.mxu0 %v1275_v9  ;;  %1212 = vmatpush3.bf16.msra.mxu1 %v1274_v8 }
  0x19   : > { %472 = vmatprep.subr.bf16.mxu0 %v1276_v10  ;;  %1213 = vmatprep.subr.bf16.mxu1 %v1278_v11 }
  0x1a   : > { %281 = vperm.xlu0 %1262, %v1421_v19   ;;  %286 = vperm.xlu1 %1263, %v252_v26  }
  0x1c   : > { %473 = vmatpush1.bf16.msra.mxu0 %v1279_v12  ;;  %1214 = vmatpush3.bf16.msra.mxu1 %v1278_v11 }
  0x1d   : > { %474 = vmatprep.subr.bf16.mxu0 %v1280_v13  ;;  %1215 = vmatprep.subr.bf16.mxu1 %v1282_v14 }
  0x1e   : > { %291 = vperm.xlu0 %1262, %v1434_v22   ;;  %296 = vperm.xlu1 %1263, %v254_v30  }
  0x20   : > { %475 = vmatpush1.bf16.msra.mxu0 %v1283_v15  ;;  %1216 = vmatpush3.bf16.msra.mxu1 %v1282_v14 }
  0x21   : > { %476 = vmatprep.subr.bf16.mxu0 %v1284_v16  ;;  %1217 = vmatprep.subr.bf16.mxu1 %v1286_v17 }
  0x22   : > { %301 = vperm.xlu0 %1262, %v255_v27   ;;  %306 = vperm.xlu1 %1263, %v256_v32  }
  0x24   : > { %477 = vmatpush1.bf16.msra.mxu0 %v1287_v20  ;;  %1218 = vmatpush3.bf16.msra.mxu1 %v1286_v17 }
  0x25   : > { %478 = vmatprep.subr.bf16.mxu0 %v1288_v23  ;;  %1219 = vmatprep.subr.bf16.mxu1 %v1290_v24 }
  0x26   : > { %311 = vperm.xlu0 %1262, %v257_v31   ;;  %316 = vperm.xlu1 %1263, %v258_v36  }
  0x28   : > { %479 = vmatpush1.bf16.msra.mxu0 %v1291_v25  ;;  %1220 = vmatpush3.bf16.msra.mxu1 %v1290_v24 }
  0x2a   : > { %1264 = vset.pattern.permute.xlu0 %v1329_v35  ;;  %1265 = vset.pattern.permute.xlu1 %v1329_v35 }
  0x2b   : > { %1183 = vmatmul.mubr.msk.bf16.vlgmr.msra.gmra.mxu0 %vm445_vm0, %v1373_v1  ;;  %1222 = vmatmul.mubr.msk.bf16.vlgmr.msra.gmra.mxu1 %vm445_vm0, %v1293_v28 }
  0x2c   : > { %506 = vmatprep.mubr.bf16.mxu0 %v1328_v0  ;;  %1225 = vmatprep.mubr.msk.bf16.mxu1 %vm445_vm0, %v1294_v29 }
  0x2d   : > { %862 = vperm.xlu0 %1264, %v1390_v2   ;;  %866 = vperm.xlu1 %1265, %v1397_v4  }
  0x31   : > { %874 = vperm.xlu0 %1264, %v1429_v21   ;;  %870 = vperm.xlu1 %1265, %v1416_v18  }
  0x33   : > { %1184 = vmatmul.mubr.msk.bf16.gmra.mxu0 %vm445_vm0, %v1293_v28  ;;  %1226 = vmatmul.mubr.msk.bf16.gmra.mxu1 %vm445_vm0, %v1295_v33 }
  0x34   : > { %516 = vmatprep.mubr.bf16.mxu0 %v1328_v0  ;;  %1229 = vmatprep.mubr.msk.bf16.mxu1 %vm445_vm0, %v1296_v34 }
  0x35   : > { %882 = vperm.xlu0 %1264, %v252_v26   ;;  %878 = vperm.xlu1 %1265, %v1421_v19  }
  0x39   : > { %890 = vperm.xlu0 %1264, %v254_v30   ;;  %886 = vperm.xlu1 %1265, %v1434_v22  }
  0x3b   : > { %1185 = vmatmul.mubr.msk.bf16.gmra.mxu0 %vm445_vm0, %v1294_v29  ;;  %1230 = vmatmul.mubr.msk.bf16.gmra.mxu1 %vm445_vm0, %v1297_v37 }
  0x3c   : > { %526 = vmatprep.mubr.bf16.mxu0 %v1328_v0 }
  0x3d   : > { %898 = vperm.xlu0 %1264, %v256_v32   ;;  %894 = vperm.xlu1 %1265, %v255_v27  }
  0x41   : > { %906 = vperm.xlu0 %1264, %v258_v36   ;;  %902 = vperm.xlu1 %1265, %v257_v31  }
  0x43   : > { %1186 = vmatmul.mubr.msk.bf16.gmra.mxu0 %vm445_vm0, %v1295_v33 }
  0x44   : > { %536 = vmatprep.mubr.bf16.mxu0 %v1328_v0 }
  0x45   : > { %1267 = vset.pattern.permute.xlu0 %v1330_v38  ;;  %1266 = vset.pattern.permute.xlu1 %v1330_v38 }
  0x46   : > { %950 = vperm.xlu0 %1267, %v1397_v4   ;;  %946 = vperm.xlu1 %1266, %v1390_v2  }
  0x4a   : > { %962 = vperm.xlu0 %1267, %v1421_v19   ;;  %954 = vperm.xlu1 %1266, %v1416_v18  }
  0x4b   : > { %1187 = vmatmul.mubr.msk.bf16.gmra.mxu0 %vm445_vm0, %v1296_v34 }
  0x4c   : > { %546 = vmatprep.mubr.bf16.mxu0 %v1328_v0 }
  0x4e   : > { %970 = vperm.xlu0 %1267, %v1434_v22   ;;  %958 = vperm.xlu1 %1266, %v1429_v21  }
  0x52   : > { %978 = vperm.xlu0 %1267, %v255_v27   ;;  %966 = vperm.xlu1 %1266, %v252_v26  }
  0x53   : > { %1188 = vmatmul.mubr.msk.bf16.gmra.mxu0 %vm445_vm0, %v1297_v37 }
  0x56   : > { %986 = vperm.xlu0 %1267, %v257_v31   ;;  %974 = vperm.xlu1 %1266, %v254_v30  }
  0x5a   : > { %982 = vperm.xlu1 %1266, %v256_v32  }
  0x5e   : > { %990 = vperm.xlu1 %1266, %v258_v36  }
  0x8a   : > { %v1503_v39 = vpop.permute.xlu1 %271  ;;  %v262_v40 = vpop.permute.xlu0 %261 }
  0x90   : > { %v267_v42 = vpop.permute.xlu0 %266 }
  0x91   : > { %v1505_v41 = vpop.permute.xlu1 %276 }
  0x95   : > { %v1507_v47 = vpop.permute.xlu0 %281  ;;  %v1509_v48 = vpop.permute.xlu1 %286 }
  0x99   : > { %v1523_v60 = vpop.permute.xlu0 %291  ;;  %v1525_v61 = vpop.permute.xlu1 %296 }
  0x9d   : > { %v1539_v10 = vpop.permute.xlu0 %301  ;;  %v1541_v11 = vpop.permute.xlu1 %306 }
  0xa1   : > { %v1552_v23 = vpop.permute.xlu0 %311  ;;  %v1554_v24 = vpop.permute.xlu1 %316 }
  0xeb   : > { %v498_v43 = vpop.f32.mrf.mxu0  ;;  %v1223_v44 = vpop.f32.mrf.mxu1 }
  0xec   : > { %v1514_v54 = vadd.f32 %v1223_v44, %v1503_v39  ;;  %v1571_v35 = vadd.f32 %v498_v43, %v262_v40 }
  0xed   : > { %v500_v45 = vpop.f32.mrf.mxu0  ;;  %v591_v46 = vpop.f32.mrf.mxu1 }
  0xee   : > { %v1511_v51 = vadd.f32 %v591_v46, %v262_v40  ;;  %v1576_v38 = vadd.f32 %v500_v45, %v262_v40 }
  0xef   : > { %v502_v49 = vpop.f32.mrf.mxu0  ;;  %v1224_v50 = vpop.f32.mrf.mxu1 }
  0xf0   : > { %v1521_v59 = vadd.f32 %v1224_v50, %v1505_v41  ;;  %v1560_v29 = vadd.f32 %v502_v49, %v267_v42 }
  0xf1   : > { %v504_v52 = vpop.f32.mrf.mxu0  ;;  %v594_v53 = vpop.f32.mrf.mxu1 }
  0xf2   : > { %v1516_v55 = vadd.f32 %v594_v53, %v267_v42  ;;  %v1562_v31 = vadd.f32 %v504_v52, %v267_v42  ;;  %v638_v46 = vadd.f32 %v1560_v29, %v1571_v35 }
  0xf3   : > { %v508_v56 = vpop.f32.mrf.mxu0  ;;  %v1227_v57 = vpop.f32.mrf.mxu1 }
  0xf4   : > { %v672_v58 = vadd.f32 %v1516_v55, %v1511_v51  ;;  %v1534_v8 = vadd.f32 %v1227_v57, %v1523_v60  ;;  %v1574_v36 = vadd.f32 %v508_v56, %v1503_v39  ;;  %v655_v43 = vadd.f32 %v1562_v31, %v1576_v38 }
  0xf5   : > { %v510_v62 = vpop.f32.mrf.mxu0  ;;  %v607_v63 = vpop.f32.mrf.mxu1 }
  0xf6   : > { %v673_v0 = vadd.f32 %v672_v58, %v1514_v54  ;;  %v1529_v1 = vadd.f32 %v607_v63, %v1507_v47  ;;  %v1579_v44 = vadd.f32 %v510_v62, %v1503_v39  ;;  %v639_v39 = vadd.f32 %v638_v46, %v1574_v36 }
  0xf7   : > { %v512_v2 = vpop.f32.mrf.mxu0  ;;  %v1228_v3 = vpop.f32.mrf.mxu1 }
  0xf8   : > { %v674_v4 = vadd.f32 %v673_v0, %v1521_v59  ;;  %v1545_v15 = vadd.f32 %v1228_v3, %v1525_v61  ;;  %v1585_v49 = vadd.f32 %v512_v2, %v1505_v41  ;;  %v656_v56 = vadd.f32 %v655_v43, %v1579_v44 }
  0xf9   : > { %v514_v5 = vpop.f32.mrf.mxu0  ;;  %v610_v6 = vpop.f32.mrf.mxu1 }
  0xfa   : > { %v675_v7 = vadd.f32 %v674_v4, %v1529_v1  ;;  %v1537_v9 = vadd.f32 %v610_v6, %v1509_v48  ;;  %v1590_v52 = vadd.f32 %v514_v5, %v1505_v41  ;;  %v640_v62 = vadd.f32 %v639_v39, %v1585_v49 }
  0xfb   : > { %v518_v12 = vpop.f32.mrf.mxu0  ;;  %v1231_v13 = vpop.f32.mrf.mxu1 }
  0xfc   : > { %v676_v14 = vadd.f32 %v675_v7, %v1537_v9  ;;  %v1565_v32 = vadd.f32 %v1231_v13, %v1552_v23  ;;  %v1595_v45 = vadd.f32 %v518_v12, %v1507_v47  ;;  %v657_v0 = vadd.f32 %v656_v56, %v1590_v52 }
  0xfd   : > { %v520_v16 = vpop.f32.mrf.mxu0  ;;  %v623_v17 = vpop.f32.mrf.mxu1 }
  0xfe   : > { %v677_v18 = vadd.f32 %v676_v14, %v1534_v8  ;;  %v1549_v19 = vadd.f32 %v623_v17, %v1539_v10  ;;  %v1599_v57 = vadd.f32 %v520_v16, %v1507_v47  ;;  %v641_v4 = vadd.f32 %v640_v62, %v1595_v45 }
  0xff   : > { %v522_v20 = vpop.f32.mrf.mxu0  ;;  %v1232_v21 = vpop.f32.mrf.mxu1 }
 0x100   : > { %v678_v22 = vadd.f32 %v677_v18, %v1545_v15  ;;  %v1569_v34 = vadd.f32 %v1232_v21, %v1554_v24  ;;  %v1603_v63 = vadd.f32 %v522_v20, %v1509_v48  ;;  %v658_v6 = vadd.f32 %v657_v0, %v1599_v57 }
 0x101   : > { %v524_v25 = vpop.f32.mrf.mxu0  ;;  %v626_v26 = vpop.f32.mrf.mxu1 }
 0x102   : > { %v679_v27 = vadd.f32 %v678_v22, %v1549_v19  ;;  %v1558_v28 = vadd.f32 %v626_v26, %v1541_v11  ;;  %v1607_v2 = vadd.f32 %v524_v25, %v1509_v48  ;;  %v642_v13 = vadd.f32 %v641_v4, %v1603_v63 }
 0x103   : > { %v528_v30 = vpop.f32.mrf.mxu0 }
 0x104   : > { %v680_v33 = vadd.f32 %v679_v27, %v1558_v28  ;;  %v1611_v5 = vadd.f32 %v528_v30, %v1523_v60  ;;  %v659_v16 = vadd.f32 %v658_v6, %v1607_v2 }
 0x105   : > { %v530_v37 = vpop.f32.mrf.mxu0 }
 0x106   : > { %v681_v42 = vadd.f32 %v680_v33, %v1565_v32  ;;  %v1615_v12 = vadd.f32 %v530_v37, %v1523_v60  ;;  %v643_v20 = vadd.f32 %v642_v13, %v1611_v5 }
 0x107   : > { %v532_v50 = vpop.f32.mrf.mxu0 }
 0x108   : > { %v682_v40 = vadd.f32 %v681_v42, %v1569_v34  ;;  %v1619_v14 = vadd.f32 %v532_v50, %v1525_v61  ;;  %v660_v25 = vadd.f32 %v659_v16, %v1615_v12 }
 0x109   : > { %v534_v53 = vpop.f32.mrf.mxu0 }
 0x10a   : > { %v683_v58 = vrot.slane %v682_v40, 4  ;;  %v1623_v18 = vadd.f32 %v534_v53, %v1525_v61  ;;  %v644_v27 = vadd.f32 %v643_v20, %v1619_v14 }
 0x10b   : > { %v538_v41 = vpop.f32.mrf.mxu0 }
 0x10c   : > { %v684_v3 = vadd.f32 %v683_v58, %v682_v40  ;;  %v1627_v21 = vadd.f32 %v538_v41, %v1539_v10  ;;  %v661_v37 = vadd.f32 %v660_v25, %v1623_v18 }
 0x10d   : > { %v540_v47 = vpop.f32.mrf.mxu0 }
 0x10e   : > { %v685_v7 = vrot.slane %v684_v3, 2  ;;  %v1631_v26 = vadd.f32 %v540_v47, %v1539_v10  ;;  %v645_v46 = vadd.f32 %v644_v27, %v1627_v21 }
 0x10f   : > { %v542_v48 = vpop.f32.mrf.mxu0 }
 0x110   : > { %v686_v17 = vadd.f32 %v685_v7, %v684_v3  ;;  %v1635_v30 = vadd.f32 %v542_v48, %v1541_v11  ;;  %v662_v40 = vadd.f32 %v661_v37, %v1631_v26 }
 0x111   : > { %v544_v22 = vpop.f32.mrf.mxu0 }
 0x112   : > { %v687_v60 = vrot.slane %v686_v17, 1  ;;  %v1639_v42 = vadd.f32 %v544_v22, %v1541_v11  ;;  %v646_v53 = vadd.f32 %v645_v46, %v1635_v30 }
 0x113   : > { %v548_v33 = vpop.f32.mrf.mxu0 }
 0x114   : > { %v688_v61 = vadd.f32 %v687_v60, %v686_v17  ;;  %v1643_v50 = vadd.f32 %v548_v33, %v1552_v23  ;;  %v663_v58 = vadd.f32 %v662_v40, %v1639_v42 }
 0x115   : > { %v550_v43 = vpop.f32.mrf.mxu0 }
 0x116   : > { %v1645_v10 = vmul.f32 0.010416667, %v688_v61  ;;  %v1649_v39 = vadd.f32 %v550_v43, %v1552_v23  ;;  %v647_v11 = vadd.f32 %v646_v53, %v1643_v50 }
 0x117   : > { %v552_v56 = vpop.f32.mrf.mxu0 }
 0x118   : > { %v1655_v62 = vadd.f32 %v552_v56, %v1554_v24  ;;  %v664_v0 = vadd.f32 %v663_v58, %v1649_v39  ;;  %v1663_v23 = vsub.f32 %v1511_v51, %v1645_v10  ;;  %v1667_v4 = vsub.f32 %v1516_v55, %v1645_v10 }
 0x119   : > { %v554_v41 = vpop.f32.mrf.mxu0  ;;  %v1677_v48 = vsub.f32 %v1514_v54, %v1645_v10  ;;  %v1681_v60 = vsub.f32 %v1521_v59, %v1645_v10  ;;  %v1687_v54 = vsub.f32 %v1529_v1, %v1645_v10  ;;  %v1695_v58 = vsub.f32 %v1537_v9, %v1645_v10 }
 0x11a   : > { %v1659_v3 = vadd.f32 %v554_v41, %v1554_v24  ;;  %v648_v47 = vadd.f32 %v647_v11, %v1655_v62  ;;  %v731_v7 = vmul.f32 %v1663_v23, %v1663_v23  ;;  %v734_v13 = vmul.f32 %v1667_v4, %v1667_v4 }
 0x11b   : > { %v737_v25 = vmul.f32 %v1677_v48, %v1677_v48  ;;  %v740_v43 = vmul.f32 %v1681_v60, %v1681_v60  ;;  %v743_v11 = vmul.f32 %v1687_v54, %v1687_v54  ;;  %v1715_v9 = vsub.f32 %v1534_v8, %v1645_v10 }
 0x11c   : > { %v665_v6 = vadd.f32 %v664_v0, %v1659_v3  ;;  %v649_v24 = vrot.slane %v648_v47, 4  ;;  %v799_v55 = vadd.f32 %v734_v13, %v731_v7 }
 0x11e   : > { %v666_v51 = vrot.slane %v665_v6, 4  ;;  %v650_v16 = vadd.f32 %v649_v24, %v648_v47  ;;  %v800_v61 = vadd.f32 %v799_v55, %v737_v25 }
 0x120   : > { %v667_v17 = vadd.f32 %v666_v51, %v665_v6  ;;  %v651_v20 = vrot.slane %v650_v16, 2  ;;  %v801_v53 = vadd.f32 %v800_v61, %v740_v43  ;;  %v1785_v43 = vsub.f32 %v1569_v34, %v1645_v10 }
 0x122   : > { %v668_v22 = vrot.slane %v667_v17, 2  ;;  %v652_v27 = vadd.f32 %v651_v20, %v650_v16  ;;  %v802_v0 = vadd.f32 %v801_v53, %v743_v11  ;;  %v1751_v20 = vsub.f32 %v1549_v19, %v1645_v10  ;;  %2134 = vst [vmem:[#allocation2_spill] sm:$0xff] %v1785_v43 }
 0x124   : > { %v669_v33 = vadd.f32 %v668_v22, %v667_v17  ;;  %v653_v37 = vrot.slane %v652_v27, 1 }
 0x126   : > { %v670_v46 = vrot.slane %v669_v33, 1  ;;  %v654_v40 = vadd.f32 %v653_v37, %v652_v27  ;;  %v1775_v37 = vsub.f32 %v1558_v28, %v1645_v10 }
 0x128   : > { %v1691_v56 = vmul.f32 0.010416667, %v654_v40  ;;  %v671_v59 = vadd.f32 %v670_v46, %v669_v33  ;;  %v1781_v46 = vsub.f32 %v1565_v32, %v1645_v10 }
 0x12a   : > { %v1701_v1 = vsub.f32 %v1571_v35, %v1691_v56  ;;  %v1705_v41 = vsub.f32 %v1560_v29, %v1691_v56  ;;  %v1709_v47 = vsub.f32 %v1574_v36, %v1691_v56  ;;  %v1711_v6 = vmul.f32 0.010416667, %v671_v59  ;;  %v1727_v36 = vpop.permute.xlu1 %866 }
 0x12b   : > { %v746_v29 = vmul.f32 %v1695_v58, %v1695_v58  ;;  %v1725_v13 = vsub.f32 %v1585_v49, %v1691_v56  ;;  %v1731_v24 = vsub.f32 %v1595_v45, %v1691_v56  ;;  %v1745_v49 = vsub.f32 %v1545_v15, %v1645_v10 }
 0x12c   : > { %v729_v7 = vmul.f32 %v1701_v1, %v1701_v1  ;;  %v732_v35 = vmul.f32 %v1705_v41, %v1705_v41  ;;  %v735_v51 = vmul.f32 %v1709_v47, %v1709_v47  ;;  %v1737_v17 = vsub.f32 %v1576_v38, %v1711_v6 }
 0x12d   : > { %v803_v8 = vadd.f32 %v802_v0, %v746_v29  ;;  %v1741_v55 = vsub.f32 %v1562_v31, %v1711_v6  ;;  %v749_v45 = vmul.f32 %v1715_v9, %v1715_v9  ;;  %v1755_v22 = vsub.f32 %v1603_v63, %v1691_v56 }
 0x12e   : > { %v765_v16 = vadd.f32 %v732_v35, %v729_v7  ;;  %v738_v38 = vmul.f32 %v1725_v13, %v1725_v13  ;;  %v1761_v25 = vsub.f32 %v1579_v44, %v1711_v6  ;;  %v730_v15 = vmul.f32 %v1737_v17, %v1737_v17  ;;  %v1777_v44 = vpop.permute.xlu1 %870 }
 0x12f   : > { %v733_v27 = vmul.f32 %v1741_v55, %v1741_v55  ;;  %v804_v19 = vadd.f32 %v803_v8, %v749_v45  ;;  %v1769_v33 = vsub.f32 %v1611_v5, %v1691_v56  ;;  %v741_v63 = vmul.f32 %v1731_v24, %v1731_v24 }
 0x130   : > { %v766_v31 = vadd.f32 %v765_v16, %v735_v51  ;;  %v1789_v5 = vsub.f32 %v1590_v52, %v1711_v6  ;;  %v752_v40 = vmul.f32 %v1745_v49, %v1745_v49  ;;  %v1795_v28 = vsub.f32 %v1619_v14, %v1691_v56 }
 0x131   : > { %v744_v53 = vmul.f32 %v1755_v22, %v1755_v22  ;;  %v755_v59 = vmul.f32 %v1751_v20, %v1751_v20  ;;  %v1803_v34 = vsub.f32 %v1599_v57, %v1711_v6  ;;  %v736_v52 = vmul.f32 %v1761_v25, %v1761_v25 }
 0x132   : > { %v767_v61 = vadd.f32 %v766_v31, %v738_v38  ;;  %v782_v10 = vadd.f32 %v733_v27, %v730_v15  ;;  %v805_v11 = vadd.f32 %v804_v19, %v752_v40  ;;  %v1809_v14 = vsub.f32 %v1627_v21, %v1691_v56  ;;  %v1829_v31 = vpop.permute.xlu1 %878 }
 0x133   : > { %v747_v0 = vmul.f32 %v1769_v33, %v1769_v33  ;;  %v758_v35 = vmul.f32 %v1775_v37, %v1775_v37  ;;  %v1817_v57 = vsub.f32 %v1607_v2, %v1711_v6  ;;  %v739_v29 = vmul.f32 %v1789_v5, %v1789_v5  ;;  %v1831_v2 = vpop.permute.xlu0 %862 }
 0x134   : > { %v768_v32 = vadd.f32 %v767_v61, %v741_v63  ;;  %v783_v8 = vadd.f32 %v782_v10, %v736_v52  ;;  %v806_v51 = vadd.f32 %v805_v11, %v755_v59  ;;  %v1823_v21 = vsub.f32 %v1635_v30, %v1691_v56 }
 0x135   : > { %v750_v16 = vmul.f32 %v1795_v28, %v1795_v28  ;;  %v761_v38 = vmul.f32 %v1781_v46, %v1781_v46  ;;  %v1835_v15 = vsub.f32 %v1615_v12, %v1711_v6  ;;  %v742_v27 = vmul.f32 %v1803_v34, %v1803_v34 }
 0x136   : > { %v769_v7 = vadd.f32 %v768_v32, %v744_v53  ;;  %v784_v30 = vadd.f32 %v783_v8, %v739_v29  ;;  %v807_v19 = vadd.f32 %v806_v51, %v758_v35  ;;  %v764_v63 = vmul.f32 %v1785_v43, %v1785_v43  ;;  %v1867_v51 = vpop.permute.xlu1 %886 }
 0x137   : > { %v1843_v61 = vsub.f32 %v1643_v50, %v1691_v56  ;;  %v753_v40 = vmul.f32 %v1809_v14, %v1809_v14  ;;  %v1849_v12 = vsub.f32 %v1623_v18, %v1711_v6  ;;  %v745_v32 = vmul.f32 %v1817_v57, %v1817_v57 }
 0x138   : > { %v770_v45 = vadd.f32 %v769_v7, %v747_v0  ;;  %v785_v59 = vadd.f32 %v784_v30, %v742_v27  ;;  %v808_v52 = vadd.f32 %v807_v19, %v761_v38  ;;  %v1855_v10 = vsub.f32 %v1655_v62, %v1691_v56  ;;  %v1869_v62 = vpop.permute.xlu0 %874 }
 0x139   : > { %2135 = vst [vmem:[#allocation3_spill] sm:$0xff] %v1849_v12  ;;  %v756_v50 = vmul.f32 %v1823_v21, %v1823_v21  ;;  %v1861_v0 = vsub.f32 %v1631_v26, %v1711_v6  ;;  %v748_v18 = vmul.f32 %v1835_v15, %v1835_v15  ;;  %v759_v29 = vmul.f32 %v1843_v61, %v1843_v61 }
 0x13a   : > { %v771_v53 = vadd.f32 %v770_v45, %v750_v16  ;;  %v786_v7 = vadd.f32 %v785_v59, %v745_v32  ;;  %v809_v35 = vadd.f32 %v808_v52, %v764_v63  ;;  %v1873_v56 = vsub.f32 %v1639_v42, %v1711_v6 }
 0x13b   : > { %v751_v26 = vmul.f32 %v1849_v12, %v1849_v12  ;;  %v762_v38 = vmul.f32 %v1855_v10, %v1855_v10  ;;  %v1881_v30 = vsub.f32 %v1649_v39, %v1711_v6  ;;  %v754_v19 = vmul.f32 %v1861_v0, %v1861_v0 }
 0x13c   : > { %v772_v11 = vadd.f32 %v771_v53, %v753_v40  ;;  %2136 = vst [vmem:[#allocation4_spill] sm:$0xff] %v1873_v56  ;;  %v787_v16 = vadd.f32 %v786_v7, %v748_v18  ;;  %v810_v45 = vrot.slane %v809_v35, 4  ;;  %v1887_v53 = vsub.f32 %v1659_v3, %v1711_v6  ;;  %v1893_v39 = vpop.permute.xlu0 %882 }
 0x13d   : > { %v757_v32 = vmul.f32 %v1873_v56, %v1873_v56  ;;  %v760_v18 = vmul.f32 %v1881_v30, %v1881_v30 }
 0x13e   : > { %v773_v8 = vadd.f32 %v772_v11, %v756_v50  ;;  %v788_v63 = vadd.f32 %v787_v16, %v751_v26  ;;  %v811_v40 = vadd.f32 %v810_v45, %v809_v35  ;;  %v1891_v11 = vpop.permute.xlu1 %894  ;;  %v763_v3 = vmul.f32 %v1887_v53, %v1887_v53 }
 0x140   : > { %v774_v27 = vadd.f32 %v773_v8, %v759_v29  ;;  %v789_v59 = vadd.f32 %v788_v63, %v754_v19  ;;  %v812_v52 = vrot.slane %v811_v40, 2  ;;  %v1901_v19 = vpop.permute.xlu0 %890 }
 0x142   : > { %v775_v42 = vadd.f32 %v774_v27, %v762_v38  ;;  %v790_v7 = vadd.f32 %v789_v59, %v757_v32  ;;  %v813_v35 = vadd.f32 %v812_v52, %v811_v40  ;;  %v1899_v27 = vpop.permute.xlu1 %902 }
 0x144   : > { %v776_v50 = vrot.slane %v775_v42, 4  ;;  %v791_v6 = vadd.f32 %v790_v7, %v760_v18  ;;  %v814_v8 = vrot.slane %v813_v35, 1 }
 0x146   : > { %v777_v29 = vadd.f32 %v776_v50, %v775_v42  ;;  %v792_v16 = vadd.f32 %v791_v6, %v763_v3  ;;  %v815_v45 = vadd.f32 %v814_v8, %v813_v35  ;;  %v1903_v52 = vpop.permute.xlu1 %946  ;;  %v1905_v50 = vpop.permute.xlu0 %898 }
 0x148   : > { %v778_v26 = vrot.slane %v777_v29, 2  ;;  %v793_v63 = vrot.slane %v792_v16, 4  ;;  %v818_v43 = vmul.f32 0.010416667, %v815_v45 }
 0x14a   : > { %v779_v38 = vadd.f32 %v778_v26, %v777_v29  ;;  %v794_v12 = vadd.f32 %v793_v63, %v792_v16  ;;  %v821_v32 = vadd.f32 1e-05, %v818_v43  ;;  %v1907_v3 = vpop.permute.xlu1 %954  ;;  %v1909_v6 = vpop.permute.xlu0 %906 }
 0x14c   : > { %v780_v56 = vrot.slane %v779_v38, 1  ;;  %v795_v42 = vrot.slane %v794_v12, 2  ;;  %1298 = vrsqrt.f32 %v821_v32 }
 0x14e   : > { %v781_v40 = vadd.f32 %v780_v56, %v779_v38  ;;  %v796_v18 = vadd.f32 %v795_v42, %v794_v12  ;;  %v1914_v26 = vpop.permute.xlu1 %958  ;;  %v1916_v16 = vpop.permute.xlu0 %950 }
 0x150   : > { %v816_v59 = vmul.f32 0.010416667, %v781_v40  ;;  %v797_v35 = vrot.slane %v796_v18, 1 }
 0x152   : > { %v819_v7 = vadd.f32 1e-05, %v816_v59  ;;  %v798_v29 = vadd.f32 %v797_v35, %v796_v18 }
 0x154   : > { %1300 = vrsqrt.f32 %v819_v7  ;;  %v817_v8 = vmul.f32 0.010416667, %v798_v29 }
 0x156   : > { %v820_v43 = vadd.f32 1e-05, %v817_v8 }
 0x158   : > { %1302 = vrsqrt.f32 %v820_v43 }
 0x159   : > { %v1911_v56 = vpop.eup %1298 }
 0x15a   : > { %v830_v12 = vmul.f32 %v1911_v56, %v1667_v4  ;;  %v833_v45 = vmul.f32 %v1911_v56, %v1677_v48  ;;  %v839_v38 = vmul.f32 %v1911_v56, %v1687_v54  ;;  %v827_v63 = vmul.f32 %v1911_v56, %v1663_v23 }
 0x15b   : > { %v845_v32 = vmul.f32 %v1911_v56, %v1715_v9  ;;  %v836_v40 = vmul.f32 %v1911_v56, %v1681_v60  ;;  %v851_v42 = vmul.f32 %v1911_v56, %v1751_v20  ;;  %v842_v4 = vmul.f32 %v1911_v56, %v1695_v58 }
 0x15c   : > { %v1935_v48 = vmul.f32 %v1727_v36, %v830_v12  ;;  %v917_v54 = vmul.f32 %v1777_v44, %v833_v45  ;;  %v1939_v59 = vmul.f32 %v1829_v31, %v839_v38  ;;  %v911_v23 = vmul.f32 %v1831_v2, %v827_v63  ;;  %v1972_v63 = vpop.permute.xlu1 %966 }
 0x15d   : > { %v1948_v60 = vmul.f32 %v1867_v51, %v845_v32  ;;  %v1951_v58 = vmul.f32 %v1869_v62, %v836_v40  ;;  %v1954_v9 = vmul.f32 %v1891_v11, %v851_v42  ;;  %v1957_v20 = vmul.f32 %v1893_v39, %v842_v4 }
 0x15e   : > { %v857_v7 = vmul.f32 %v1911_v56, %v1781_v46  ;;  %v848_v35 = vmul.f32 %v1911_v56, %v1745_v49  ;;  %v995_v29 = vadd.f32 %v1903_v52, %v911_v23  ;;  %v854_v8 = vmul.f32 %v1911_v56, %v1775_v37  ;;  %v1974_v46 = vpop.permute.xlu0 %962 }
 0x160   : > { %1031 = vst [vmem:[%s1945_s8 + $0x10] sm:$0xff] %v995_v29  ;;  %v2000_v23 = vmul.f32 %v1899_v27, %v857_v7 }
 0x161   : > { %v1301_v18 = vpop.eup %1300 }
 0x162   : > { %v1967_v43 = vmul.f32 %v1301_v18, %v1855_v10  ;;  %v828_v12 = vmul.f32 %v1301_v18, %v1705_v41  ;;  %v831_v45 = vmul.f32 %v1301_v18, %v1709_v47  ;;  %v837_v38 = vmul.f32 %v1301_v18, %v1731_v24 }
 0x163   : > { %v825_v49 = vmul.f32 %v1301_v18, %v1701_v1  ;;  %v843_v32 = vmul.f32 %v1301_v18, %v1769_v33  ;;  %v834_v40 = vmul.f32 %v1301_v18, %v1725_v13  ;;  %v849_v37 = vmul.f32 %v1301_v18, %v1809_v14 }
 0x164   : > { %v1982_v10 = vmul.f32 %v1727_v36, %v828_v12  ;;  %v915_v41 = vmul.f32 %v1777_v44, %v831_v45  ;;  %v1986_v47 = vmul.f32 %v1829_v31, %v837_v38  ;;  %v840_v24 = vmul.f32 %v1301_v18, %v1755_v22 }
 0x165   : > { %v909_v42 = vmul.f32 %v1831_v2, %v825_v49  ;;  %v1991_v1 = vmul.f32 %v1867_v51, %v843_v32  ;;  %v918_v13 = vmul.f32 %v1869_v62, %v834_v40  ;;  %v1995_v33 = vmul.f32 %v1891_v11, %v849_v37  ;;  %v1303_v49 = vpop.eup %1302  ;;  %v975_v32 = vpop.permute.xlu1 %974 }
 0x166   : > { %v924_v14 = vmul.f32 %v1893_v39, %v840_v24  ;;  %v855_v4 = vmul.f32 %v1301_v18, %v1843_v61  ;;  %v846_v29 = vmul.f32 %v1301_v18, %v1795_v28  ;;  %v2004_v22 = vmul.f32 %v1901_v19, %v848_v35  ;;  %v2017_v40 = vpop.permute.xlu0 %970 }
 0x167   : > { %v993_v12 = vadd.f32 %v1903_v52, %v909_v42  ;;  %v852_v45 = vmul.f32 %v1301_v18, %v1823_v21  ;;  %v2009_v38 = vmul.f32 %v1905_v50, %v854_v8  ;;  %v999_v28 = vadd.f32 %v1907_v3, %v915_v41 }
 0x168   : > { %v2012_v61 = vmul.f32 %v1899_v27, %v855_v4  ;;  %v930_v7 = vmul.f32 %v1901_v19, %v846_v29  ;;  %v1001_v35 = vadd.f32 %v1907_v3, %v917_v54  ;;  %v859_v21 = vmul.f32 %v1303_v49, %v1887_v53 }
 0x169   : > { %v829_v18 = vmul.f32 %v1303_v49, %v1741_v55  ;;  %v832_v8 = vmul.f32 %v1303_v49, %v1761_v25  ;;  %v838_v37 = vmul.f32 %v1303_v49, %v1803_v34  ;;  %1029 = vst [vmem:[%s1945_s8] sm:$0xff] %v993_v12  ;;  %v826_v24 = vmul.f32 %v1303_v49, %v1737_v17 }
 0x16a   : > { %v844_v42 = vmul.f32 %v1303_v49, %v1835_v15  ;;  %v835_v41 = vmul.f32 %v1303_v49, %v1789_v5  ;;  %v850_v54 = vmul.f32 %v1303_v49, %v1861_v0  ;;  %1035 = vst [vmem:[%s1945_s8 + $0x30] sm:$0xff] %v999_v28  ;;  %1037 = vst [vmem:[%s1945_s8 + $0x40] sm:$0xff] %v1001_v35  ;;  %v979_v35 = vpop.permute.xlu0 %978 }
 0x16b   : > { %v913_v4 = vmul.f32 %v1727_v36, %v829_v18  ;;  %v916_v53 = vmul.f32 %v1777_v44, %v832_v8  ;;  %v922_v55 = vmul.f32 %v1829_v31, %v838_v37  ;;  %v841_v25 = vmul.f32 %v1303_v49, %v1817_v57  ;;  %v2137_v44 = vld [vmem:[#allocation3_spill] sm:$0xff]  ;;  %v2138_v31 = vld [vmem:[#allocation4_spill] sm:$0xff] }
 0x16c   : > { %v910_v34 = vmul.f32 %v1831_v2, %v826_v24  ;;  %v928_v17 = vmul.f32 %v1867_v51, %v844_v42  ;;  %v919_v15 = vmul.f32 %v1869_v62, %v835_v41  ;;  %v2038_v5 = vmul.f32 %v1891_v11, %v850_v54  ;;  %v2139_v62 = vld [vmem:[#allocation2_spill] sm:$0xff]  ;;  %v983_v11 = vpop.permute.xlu1 %982 }
 0x16d   : > { %v925_v0 = vmul.f32 %v1893_v39, %v841_v25  ;;  %v856_v36 = vmul.f32 %v1303_v49, %v1881_v30  ;;  %v847_v29 = vmul.f32 %v1303_v49, %v2137_v44  ;;  %v853_v12 = vmul.f32 %v1303_v49, %v2138_v31 }
 0x16e   : > { %v994_v57 = vadd.f32 %v1903_v52, %v910_v34  ;;  %v936_v2 = vmul.f32 %v1905_v50, %v852_v45  ;;  %v1000_v51 = vadd.f32 %v1907_v3, %v916_v53  ;;  %v860_v28 = vmul.f32 %v1911_v56, %v2139_v62 }
 0x16f   : > { %v940_v39 = vmul.f32 %v1899_v27, %v856_v36  ;;  %v931_v30 = vmul.f32 %v1901_v19, %v847_v29  ;;  %v937_v18 = vmul.f32 %v1905_v50, %v853_v12  ;;  %v942_v52 = vmul.f32 %v1909_v6, %v1967_v43 }
 0x170   : > { %1030 = vst [vmem:[%s1945_s8 + $0x8] sm:$0xff] %v994_v57  ;;  %1036 = vst [vmem:[%s1945_s8 + $0x38] sm:$0xff] %v1000_v51  ;;  %v943_v3 = vmul.f32 %v1909_v6, %v859_v21  ;;  %v944_v56 = vmul.f32 %v1909_v6, %v860_v28  ;;  %v1002_v45 = vadd.f32 %v1914_v26, %v918_v13  ;;  %v987_v21 = vpop.permute.xlu0 %986 }
 0x171   : > { %v1003_v27 = vadd.f32 %v1914_v26, %v919_v15  ;;  %v1004_v19 = vadd.f32 %v1914_v26, %v1951_v58  ;;  %v1008_v50 = vadd.f32 %v1972_v63, %v924_v14  ;;  %v1009_v43 = vadd.f32 %v1972_v63, %v925_v0 }
 0x172   : > { %v1010_v49 = vadd.f32 %v1972_v63, %v1957_v20  ;;  %1038 = vst [vmem:[%s1945_s8 + $0x48] sm:$0xff] %v1002_v45  ;;  %v996_v6 = vadd.f32 %v1916_v16, %v1982_v10  ;;  %v997_v13 = vadd.f32 %v1916_v16, %v913_v4  ;;  %v998_v26 = vadd.f32 %v1916_v16, %v1935_v48 }
 0x173   : > { %1039 = vst [vmem:[%s1945_s8 + $0x50] sm:$0xff] %v1003_v27  ;;  %v1014_v58 = vadd.f32 %v975_v32, %v930_v7  ;;  %1040 = vst [vmem:[%s1945_s8 + $0x58] sm:$0xff] %v1004_v19  ;;  %v1015_v20 = vadd.f32 %v975_v32, %v931_v30  ;;  %v1016_v63 = vadd.f32 %v975_v32, %v2004_v22  ;;  %v991_v32 = vpop.permute.xlu1 %990 }
 0x174   : > { %1044 = vst [vmem:[%s1945_s8 + $0x78] sm:$0xff] %v1008_v50  ;;  %1045 = vst [vmem:[%s1945_s8 + $0x80] sm:$0xff] %v1009_v43  ;;  %v1005_v10 = vadd.f32 %v1974_v46, %v1986_v47  ;;  %v1006_v14 = vadd.f32 %v1974_v46, %v922_v55  ;;  %v1007_v16 = vadd.f32 %v1974_v46, %v1939_v59 }
 0x175   : > { %1046 = vst [vmem:[%s1945_s8 + $0x88] sm:$0xff] %v1010_v49  ;;  %1032 = vst [vmem:[%s1945_s8 + $0x18] sm:$0xff] %v996_v6  ;;  %v1020_v48 = vadd.f32 %v983_v11, %v936_v2  ;;  %v1021_v7 = vadd.f32 %v983_v11, %v937_v18  ;;  %v1022_v22 = vadd.f32 %v983_v11, %v2009_v38 }
 0x176   : > { %1033 = vst [vmem:[%s1945_s8 + $0x20] sm:$0xff] %v997_v13  ;;  %1034 = vst [vmem:[%s1945_s8 + $0x28] sm:$0xff] %v998_v26  ;;  %v1011_v47 = vadd.f32 %v2017_v40, %v1991_v1  ;;  %v1012_v59 = vadd.f32 %v2017_v40, %v928_v17  ;;  %v1013_v46 = vadd.f32 %v2017_v40, %v1948_v60 }
 0x177   : > { %1050 = vst [vmem:[%s1945_s8 + $0xa8] sm:$0xff] %v1014_v58  ;;  %1051 = vst [vmem:[%s1945_s8 + $0xb0] sm:$0xff] %v1015_v20  ;;  %v1026_v8 = vadd.f32 %v991_v32, %v942_v52  ;;  %v1027_v38 = vadd.f32 %v991_v32, %v943_v3  ;;  %v1028_v37 = vadd.f32 %v991_v32, %v944_v56 }
 0x178   : > { %1052 = vst [vmem:[%s1945_s8 + $0xb8] sm:$0xff] %v1016_v63  ;;  %1041 = vst [vmem:[%s1945_s8 + $0x60] sm:$0xff] %v1005_v10  ;;  %v1017_v1 = vadd.f32 %v979_v35, %v1995_v33  ;;  %v1018_v24 = vadd.f32 %v979_v35, %v2038_v5  ;;  %v1019_v60 = vadd.f32 %v979_v35, %v1954_v9 }
 0x179   : > { %1042 = vst [vmem:[%s1945_s8 + $0x68] sm:$0xff] %v1006_v14  ;;  %1043 = vst [vmem:[%s1945_s8 + $0x70] sm:$0xff] %v1007_v16  ;;  %v1023_v40 = vadd.f32 %v987_v21, %v2012_v61  ;;  %v1024_v42 = vadd.f32 %v987_v21, %v940_v39  ;;  %v1025_v41 = vadd.f32 %v987_v21, %v2000_v23 }
 0x17a   : > { %1056 = vst [vmem:[%s1945_s8 + $0xd8] sm:$0xff] %v1020_v48  ;;  %1057 = vst [vmem:[%s1945_s8 + $0xe0] sm:$0xff] %v1021_v7 }
 0x17b   : > { %1058 = vst [vmem:[%s1945_s8 + $0xe8] sm:$0xff] %v1022_v22  ;;  %1047 = vst [vmem:[%s1945_s8 + $0x90] sm:$0xff] %v1011_v47 }
 0x17c   : > { %1048 = vst [vmem:[%s1945_s8 + $0x98] sm:$0xff] %v1012_v59  ;;  %1049 = vst [vmem:[%s1945_s8 + $0xa0] sm:$0xff] %v1013_v46 }
 0x17d   : > { %1062 = vst [vmem:[%s1945_s8 + $0x108] sm:$0xff] %v1026_v8  ;;  %1063 = vst [vmem:[%s1945_s8 + $0x110] sm:$0xff] %v1027_v38 }
 0x17e   : > { %1064 = vst [vmem:[%s1945_s8 + $0x118] sm:$0xff] %v1028_v37  ;;  %1053 = vst [vmem:[%s1945_s8 + $0xc0] sm:$0xff] %v1017_v1 }
 0x17f   : > { %1054 = vst [vmem:[%s1945_s8 + $0xc8] sm:$0xff] %v1018_v24  ;;  %1055 = vst [vmem:[%s1945_s8 + $0xd0] sm:$0xff] %v1019_v60 }
 0x180   : > { %1059 = vst [vmem:[%s1945_s8 + $0xf0] sm:$0xff] %v1023_v40  ;;  %1060 = vst [vmem:[%s1945_s8 + $0xf8] sm:$0xff] %v1024_v42 }
 0x181   : > { %1061 = vst [vmem:[%s1945_s8 + $0x100] sm:$0xff] %v1025_v41 }
 0x182 PF: > { %s13_s14 = sadd.s32 1, %s1326_s14   ;;  %s2140_s12 = smov %s1322_s13 }
 0x183   : > { %p10_p5 = scmp.ge.s32.totalorder %s13_s14, 4   ;;  %s2141_s13 = smov %s2143_s15 }
 0x185   :  { %12 = sbr.rel (!%p10_p5) target bundleno = 2 (0x2), region = 62 }

</bundles_post_ra>
